<compile_context>
chip_gen: v7x
topology: tpu7x:2x2x1
jax: 0.10.0
libtpu: 0.0.40
codegen_flags: <defaults>
</compile_context>

<pallas_src>
import jax
import jax.numpy as jnp
from jax.experimental import pallas as pl
from jax.experimental.pallas import tpu as pltpu


def channel_attention_kernel(x_ref, w1_ref, b1_ref, w2t_ref, b2_ref, o_ref):
    # x_ref  : (Bn, C, HW)  -- C on sublanes, HW (lane-dense) on lanes
    # w1_ref : (hid, C)     -- first 1x1 conv weight
    # b1_ref : (1, hid)     -- lane-major bias
    # w2t_ref: (hid, C)     -- second 1x1 conv weight, pre-transposed on the host
    # b2_ref : (1, C)       -- lane-major bias
    x = x_ref[...]

    # AdaptiveAvgPool2d(1): global spatial mean per (sample, channel), accumulated in f32.
    pooled = jnp.mean(x.astype(jnp.float32), axis=2)                       # (Bn, C)

    # SE bottleneck on VPU/XLU only (dims far too small for the MXU; these VALU/XLU slots
    # are otherwise idle in this memory-bound kernel).
    # z[b,h] = relu( sum_c pooled[b,c] * w1[h,c] + b1[h] )
    z = jnp.sum(pooled[:, None, :] * w1_ref[...][None, :, :], axis=2)      # (Bn, hid)
    z = jnp.maximum(z + b1_ref[...], 0.0)
    # y[b,c] = sum_h z[b,h] * w2t[h,c] + b2[c]
    y = jnp.sum(z[:, :, None] * w2t_ref[...][None, :, :], axis=1)          # (Bn, C)
    gate = jax.nn.sigmoid(y + b2_ref[...])                                 # (Bn, C), f32 (EUP)

    # Broadcast the per-channel gate over all spatial positions (lane broadcast), one pass.
    o_ref[...] = (x * gate[:, :, None].astype(x.dtype)).astype(o_ref.dtype)


def channel_attention(x, w1, b1, w2, b2, *, block_n=None):
    """x: (N, C, H, W). Returns x * sigmoid(W2 @ relu(W1 @ avgpool(x) + b1) + b2)."""
    N, C, H, W = x.shape
    HW = H * W
    hid = w1.shape[0]

    if block_n is None:
        # Batch several samples per (Bn, C, HW) block to amortize the fixed per-grid-step
        # cost, while keeping >= 2 grid steps whenever N >= 2 so the parallel batch axis
        # can be sharded across v7x's two TensorCores.  On v5e/v6e (single TC) callers may
        # pass block_n=N to collapse the grid to one big step.
        block_n = max(1, N // 2)
    block_n = min(block_n, N)
    grid_n = pl.cdiv(N, block_n)

    x_flat = x.reshape(N, C, HW)
    b1_2d = b1.reshape(1, hid)        # lane-major bias (hid on lanes)
    b2_2d = b2.reshape(1, C)          # lane-major bias (C on lanes)
    w2t = w2.T                        # (hid, C): pre-transpose on the host, never in-kernel

    # Per-block VMEM footprint: in + out, each double-buffered by the pipeline.
    block_bytes = block_n * C * HW * x.dtype.itemsize
    vmem_limit = int(min(64 * 1024 * 1024, max(32 * 1024 * 1024, 8 * block_bytes)))

    # TODO(synk): at production CRFamba resolutions (large H*W, C~64-180) add an HW tile
    # axis (pool into VMEM scratch in a first pass, gate in a second) so the (Bn, C, HW)
    # slab stays within v7x's 64 MiB VMEM instead of relying on v5e/v6e's 128 MiB.

    out = pl.pallas_call(
        channel_attention_kernel,
        out_shape=jax.ShapeDtypeStruct((N, C, HW), x.dtype),
        grid_spec=pltpu.PrefetchScalarGridSpec(
            num_scalar_prefetch=0,
            grid=(grid_n,),
            in_specs=[
                pl.BlockSpec((block_n, C, HW), lambda n: (n, 0, 0)),
                pl.BlockSpec((hid, C), lambda n: (0, 0)),
                pl.BlockSpec((1, hid), lambda n: (0, 0)),
                pl.BlockSpec((hid, C), lambda n: (0, 0)),
                pl.BlockSpec((1, C), lambda n: (0, 0)),
            ],
            out_specs=pl.BlockSpec((block_n, C, HW), lambda n: (n, 0, 0)),
        ),
        compiler_params=pltpu.CompilerParams(
            dimension_semantics=("parallel",),
            vmem_limit_bytes=vmem_limit),
    )(x_flat, w1, b1_2d, w2t, b2_2d)
    return out.reshape(N, C, H, W)


def reference(x, w1, b1, w2, b2):
    pooled = jnp.mean(x, axis=(2, 3))                       # (N, C)
    z = jnp.maximum(pooled @ w1.T + b1, 0.0)                # (N, hid)
    y = jax.nn.sigmoid(z @ w2.T + b2)                       # (N, C)
    return x * y[:, :, None, None]


if __name__ == "__main__":
    key = jax.random.PRNGKey(0)
    # Small ChannelAttention-consistent shapes.  (RSSB's CAB uses squeeze_factor=30; the
    # kernel is fully parametric in C / squeeze_factor.)
    N, C, H, W = 2, 32, 16, 16
    squeeze_factor = 16
    hid = C // squeeze_factor

    k_x, k_w1, k_b1, k_w2, k_b2 = jax.random.split(key, 5)
    x = jax.random.normal(k_x, (N, C, H, W), dtype=jnp.float32)
    # Conv2d(num_feat, num_feat//sq, 1): weight (hid, C, 1, 1) -> (hid, C)
    w1 = jax.random.normal(k_w1, (hid, C), dtype=jnp.float32) * 0.1
    b1 = jax.random.normal(k_b1, (hid,), dtype=jnp.float32) * 0.1
    # Conv2d(num_feat//sq, num_feat, 1): weight (C, hid, 1, 1) -> (C, hid)
    w2 = jax.random.normal(k_w2, (C, hid), dtype=jnp.float32) * 0.1
    b2 = jax.random.normal(k_b2, (C,), dtype=jnp.float32) * 0.1

    out = channel_attention(x, w1, b1, w2, b2)
    out = jax.block_until_ready(out)

    ref = reference(x, w1, b1, w2, b2)
    assert out.shape == (N, C, H, W)
    assert jnp.allclose(out, ref, atol=1e-5, rtol=1e-5), "mismatch vs reference"
    print("KERNEL_OK")
</pallas_src>

<mosaic_0001>
module attributes {stable_mosaic.version = 11 : i64} {
  func.func @channel_attention_kernel(%arg0: i32, %arg1: memref<1x32x256xf32, #tpu.memory_space<vmem>>, %arg2: memref<2x32xf32, #tpu.memory_space<vmem>>, %arg3: memref<1x2xf32, #tpu.memory_space<vmem>>, %arg4: memref<2x32xf32, #tpu.memory_space<vmem>>, %arg5: memref<1x32xf32, #tpu.memory_space<vmem>>, %arg6: memref<1x32x256xf32, #tpu.memory_space<vmem>>) attributes {dimension_semantics = [#tpu.dimension_semantics<parallel>], iteration_bounds = array<i64: 2>, scalar_prefetch = 0 : i64, scratch_operands = 0 : i64, tpu.core_type = #tpu.core_type<tc>, window_params = [{transform_indices = @transform_0, window_bounds = array<i64: 1, 32, 256>}, {pipeline_mode = #tpu.pipeline_mode<synchronous>, transform_indices = @transform_1, window_bounds = array<i64: 2, 32>}, {pipeline_mode = #tpu.pipeline_mode<synchronous>, transform_indices = @transform_2, window_bounds = array<i64: 1, 2>}, {pipeline_mode = #tpu.pipeline_mode<synchronous>, transform_indices = @transform_3, window_bounds = array<i64: 2, 32>}, {pipeline_mode = #tpu.pipeline_mode<synchronous>, transform_indices = @transform_4, window_bounds = array<i64: 1, 32>}, {transform_indices = @transform_5, window_bounds = array<i64: 1, 32, 256>}]} {
    %c0 = arith.constant 0 : index
    %c0_0 = arith.constant 0 : index
    %c0_1 = arith.constant 0 : index
    %0 = vector.load %arg1[%c0, %c0_0, %c0_1] : memref<1x32x256xf32, #tpu.memory_space<vmem>>, vector<1x32x256xf32>
    %cst = arith.constant dense<0.000000e+00> : vector<1x32xf32>
    %1 = vector.multi_reduction <add>, %0, %cst [2] : vector<1x32x256xf32> to vector<1x32xf32>
    %cst_2 = arith.constant 2.560000e+02 : f32
    %2 = vector.broadcast %cst_2 : f32 to vector<1x32xf32>
    %3 = arith.divf %1, %2 : vector<1x32xf32>
    %4 = vector.shape_cast %3 : vector<1x32xf32> to vector<1x1x32xf32>
    %c0_3 = arith.constant 0 : index
    %c0_4 = arith.constant 0 : index
    %5 = vector.load %arg2[%c0_3, %c0_4] : memref<2x32xf32, #tpu.memory_space<vmem>>, vector<2x32xf32>
    %6 = vector.shape_cast %5 : vector<2x32xf32> to vector<1x2x32xf32>
    %7 = vector.broadcast %4 : vector<1x1x32xf32> to vector<1x2x32xf32>
    %8 = arith.mulf %7, %6 : vector<1x2x32xf32>
    %cst_5 = arith.constant dense<0.000000e+00> : vector<1x2xf32>
    %9 = vector.multi_reduction <add>, %8, %cst_5 [2] : vector<1x2x32xf32> to vector<1x2xf32>
    %c0_6 = arith.constant 0 : index
    %c0_7 = arith.constant 0 : index
    %10 = vector.load %arg3[%c0_6, %c0_7] : memref<1x2xf32, #tpu.memory_space<vmem>>, vector<1x2xf32>
    %11 = arith.addf %9, %10 : vector<1x2xf32>
    %cst_8 = arith.constant 0.000000e+00 : f32
    %12 = vector.broadcast %cst_8 : f32 to vector<1x2xf32>
    %13 = arith.maximumf %11, %12 : vector<1x2xf32>
    %14 = vector.shape_cast %13 : vector<1x2xf32> to vector<1x2x1xf32>
    %c0_9 = arith.constant 0 : index
    %c0_10 = arith.constant 0 : index
    %15 = vector.load %arg4[%c0_9, %c0_10] : memref<2x32xf32, #tpu.memory_space<vmem>>, vector<2x32xf32>
    %16 = vector.shape_cast %15 : vector<2x32xf32> to vector<1x2x32xf32>
    %17 = vector.broadcast %14 : vector<1x2x1xf32> to vector<1x2x32xf32>
    %18 = arith.mulf %17, %16 : vector<1x2x32xf32>
    %cst_11 = arith.constant dense<0.000000e+00> : vector<1x32xf32>
    %19 = vector.multi_reduction <add>, %18, %cst_11 [1] : vector<1x2x32xf32> to vector<1x32xf32>
    %c0_12 = arith.constant 0 : index
    %c0_13 = arith.constant 0 : index
    %20 = vector.load %arg5[%c0_12, %c0_13] : memref<1x32xf32, #tpu.memory_space<vmem>>, vector<1x32xf32>
    %21 = arith.addf %19, %20 : vector<1x32xf32>
    %22 = arith.negf %21 : vector<1x32xf32>
    %23 = math.exp %22 : vector<1x32xf32>
    %cst_14 = arith.constant 1.000000e+00 : f32
    %24 = vector.broadcast %cst_14 : f32 to vector<1x32xf32>
    %25 = arith.addf %24, %23 : vector<1x32xf32>
    %26 = arith.divf %24, %25 : vector<1x32xf32>
    %27 = vector.shape_cast %26 : vector<1x32xf32> to vector<1x32x1xf32>
    %28 = vector.broadcast %27 : vector<1x32x1xf32> to vector<1x32x256xf32>
    %29 = arith.mulf %0, %28 : vector<1x32x256xf32>
    %c0_15 = arith.constant 0 : index
    %c0_16 = arith.constant 0 : index
    %c0_17 = arith.constant 0 : index
    %30 = vector.load %arg6[%c0_15, %c0_16, %c0_17] : memref<1x32x256xf32, #tpu.memory_space<vmem>>, vector<1x32x256xf32>
    tpu.vector_store %arg6[%c0_15, %c0_16, %c0_17], %29 {strides = array<i32>} : memref<1x32x256xf32, #tpu.memory_space<vmem>>, vector<1x32x256xf32>,
    return
  }
  func.func @transform_0(%arg0: i32) -> (i32, i32, i32) {
    %c0_i32 = arith.constant 0 : i32
    %c0_i32_0 = arith.constant 0 : i32
    %c0_i32_1 = arith.constant 0 : i32
    return %arg0, %c0_i32, %c0_i32_0 : i32, i32, i32
  }
  func.func @transform_1(%arg0: i32) -> (i32, i32) {
    %c0_i32 = arith.constant 0 : i32
    %c0_i32_0 = arith.constant 0 : i32
    %c0_i32_1 = arith.constant 0 : i32
    return %c0_i32, %c0_i32_0 : i32, i32
  }
  func.func @transform_2(%arg0: i32) -> (i32, i32) {
    %c0_i32 = arith.constant 0 : i32
    %c0_i32_0 = arith.constant 0 : i32
    %c0_i32_1 = arith.constant 0 : i32
    return %c0_i32, %c0_i32_0 : i32, i32
  }
  func.func @transform_3(%arg0: i32) -> (i32, i32) {
    %c0_i32 = arith.constant 0 : i32
    %c0_i32_0 = arith.constant 0 : i32
    %c0_i32_1 = arith.constant 0 : i32
    return %c0_i32, %c0_i32_0 : i32, i32
  }
  func.func @transform_4(%arg0: i32) -> (i32, i32) {
    %c0_i32 = arith.constant 0 : i32
    %c0_i32_0 = arith.constant 0 : i32
    %c0_i32_1 = arith.constant 0 : i32
    return %c0_i32, %c0_i32_0 : i32, i32
  }
  func.func @transform_5(%arg0: i32) -> (i32, i32, i32) {
    %c0_i32 = arith.constant 0 : i32
    %c0_i32_0 = arith.constant 0 : i32
    %c0_i32_1 = arith.constant 0 : i32
    return %arg0, %c0_i32, %c0_i32_0 : i32, i32, i32
  }
}

</mosaic_0001>

<bundles_post_ra>
// kernel: tpu_custom_call.1
= control target key start
LH: loop header
LB: loop body
LE: loop exit
PB: predicated region body
PF: predicated region fallthrough
CT: control target
= control target key end

     0   :  { %10 = vsyncpa [#allocation3], 0  ;;  %s997_s0 = inlined_call_operand.hbm [shape: f32[2,32,256], index: 0, kind: input, shape index: {}]   ;;  %s998_s1 = inlined_call_operand.vmem [shape: f32[2,32], index: 1, kind: input, shape index: {}]   ;;  %s999_s2 = inlined_call_operand.vmem [shape: f32[1,2], index: 2, kind: input, shape index: {}]   ;;  %s1000_s3 = inlined_call_operand.vmem [shape: f32[2,32], index: 3, kind: input, shape index: {}]   ;;  %s1001_s4 = inlined_call_operand.vmem [shape: f32[1,32], index: 4, kind: input, shape index: {}]   ;;  %s1002_s5 = inlined_call_operand.hbm [shape: f32[2,32,256], index: 5, kind: output, shape index: {}]  }
   0x1   :  { %12 = vsyncpa [#allocation3 + $0x1], 0 }
   0x2   :  { %13 = vsyncpa [#allocation4], 0 }
   0x3   :  { %15 = vsyncpa [#allocation4 + $0x1], 0  ;;  %s775_s18 = smov 0   ;;  %s777_s19 = smov 0  }
   0x4   :  { %s779_s20 = smov 0   ;;  %s781_s21 = smov 0  }
   0x5 LB: > { %s796_s22 = sadd.s32 4294967295, %s736_s21   ;;  %s565_s23 = sadd.s32 4294967294, %s736_s21   ;;  %s736_s21 = sphi %s781_s21, %s1015_s21   ;;  %s732_s20 = sphi %s779_s20, %s1014_s20   ;;  %s728_s19 = sphi %s777_s19, %s1013_s19   ;;  %s724_s18 = sphi %s775_s18, %s1012_s18  }
   0x6   : > { %s800_s24 = sadd.s32 1, %s736_s21   ;;  %s28_s25 = sadd.s32 1, %s732_s20 }
   0x7   : > { %s25_s26 = ssub.s32 %s736_s21, %s800_s24  ;;  %p35_p0 = scmp.ne.s32.totalorder %s732_s20, %s728_s19 }
   0x8   : > { %p26_p1 = scmp.eq.s32.totalorder %s25_s26, 0  ;;  %p36_p2 = scmp.eq.s32.totalorder %s736_s21, 0 }
   0x9   : > { %p41_p3 = scmp.ne.s32.totalorder %s728_s19, %s724_s18  ;;  %p42_p4 = scmp.eq.s32.totalorder %s796_s22, 0 }
   0xa   : > { %s812_s27 = scalar_select %p26_p1, %s732_s20, %s28_s25  }
   0xb   : > { %p814_p5 = por %p36_p2, %p35_p0  ;;  %p818_p6 = por %p42_p4, %p41_p3 }
   0xc   : > { %p149_p7 = scmp.eq.s32.totalorder %s796_s22, 1  ;;  %p155_p8 = scmp.eq.s32.totalorder %s565_s23, 1 }
   0xd   : > { %p595_p10 = scmp.lt.s32.totalorder %s736_s21, 2  ;;  %s187_s7 = sand.u32 1, %s732_s20  }
   0xe   : > { %p825_p11 = por %p149_p7, %p35_p0  ;;  %p829_p12 = por %p155_p8, %p41_p3 }
   0xf   : > { %s581_s8 = sshll.u32 %s736_s21, 10  ;;  %s568_s9 = sshll.u32 %s187_s7, 6 }
  0x10   : > { %s1006_s30 = scalar_select %p825_p11, 1, 0 }
  0x11   : > { %s1007_s6 = scalar_select %p829_p12, 1, 0 }
  0x12   : > { %s838_s12 = scalar_lea.hbm %s997_s0, %s581_s8  ;;  %s191_s13 = scalar_lea.vmem [#allocation2], %s568_s9 }
  0x13   : > { %s198_s14 = sshll.u32 %s191_s13, 4  ;;  %p842_p13 = pnand %p595_p10, %p814_p5  ;;  %s846_s14 = int_to_ptr.vmem [resolvable:$true] %s198_s14 }
  0x14   : > { %s848_s16 = scalar_lea.sflag [#allocation3], %s187_s7  ;;  %s640_s17 = scalar_lea.hbm %s838_s12, 1024 }
  0x15   : > { %p641_p0 = scmp.ne.s32.totalorder %s838_s12, %s640_s17  ;;  %p642_p1 = pneg %p842_p13 }
  0x16   : > { %s645_s26 = scalar_lea.hbm %s997_s0, 2048  ;;  %p646_p4 = scmp.lt.u32.totalorder %s838_s12, %s997_s0 }
  0x17   : > { %p643_p2 = pnand %p642_p1, %p641_p0  ;;  %p647_p5 = scmp.lt.u32.totalorder %s645_s26, %s640_s17 }
  0x18   : > { %p649_p8 = scmp.lt.u32.totalorder %s640_s17, %s838_s12 }
  0x19   : > { %p644_p3 = pneg %p643_p2  ;;  %p648_p7 = por %p647_p5, %p646_p4 }
  0x1b   : > { %p650_p10 = por %p649_p8, %p648_p7 }
  0x1d   : > { %p651_p9 = pnand %p650_p10, %p644_p3 }
  0x1f   : > { %654 = shalt.err (!%p651_p9)
}
  0x20   : > { %s655_s7 = scalar_lea.vmem %s846_s14, 1024  ;;  %s738_s9 = smov [#allocation2]  }
  0x21   : > { %p656_p0 = scmp.ne.s32.totalorder %s846_s14, %s655_s7  ;;  %s660_s10 = sshll.u32 %s738_s9, 4  ;;  %s661_s10 = int_to_ptr.vmem [resolvable:$false] %s660_s10 }
  0x22   : > { %s662_s11 = scalar_lea.vmem %s661_s10, 2048  ;;  %p663_p11 = scmp.lt.s32.totalorder %s846_s14, %s661_s10 }
  0x23   : > { %p658_p2 = pnand %p656_p0, %p642_p1  ;;  %p664_p4 = scmp.lt.s32.totalorder %s662_s11, %s655_s7 }
  0x25   : > { %p659_p12 = pneg %p658_p2  ;;  %p665_p5 = por %p664_p4, %p663_p11 }
  0x27   : > { %p666_p7 = pnand %p665_p5, %p659_p12 }
  0x29   : > { %669 = shalt.err (!%p666_p7)
}
  0x2a   : > { %s739_s13 = smov 256   ;;  %s740_s17 = smov 16  }
  0x2b   : > { %590 = dma.hbm_to_vmem [thread:$0]  (!%p842_p13), %s838_s12, 1024, %s846_s14, %s848_s16, %s739_s13, %s739_s13, %s740_s17  }
  0x2c   : > { %p571_p9 = scmp.ge.s32.totalorder %s736_s21, 1  ;;  %p206_p1 = scmp.lt.s32.totalorder %s736_s21, 3 }
  0x2e   : > { %p207_p3 = pnand %p571_p9, %p206_p1 }
  0x2f   : > { %s879_s23 = sand.u32 (!%p207_p3), 1, %s728_s19  }
  0x30   : > { %210 = sbr.rel (%p207_p3) target bundleno = 823 (0x337), region = 40  ;;  %s572_s25 = sshll.u32 (!%p207_p3), %s879_s23, 6 }
  0x31   : > { %s213_s26 = scalar_lea.sflag (!%p207_p3), [#allocation3], %s879_s23  ;;  %s216_s28 = scalar_lea.vmem (!%p207_p3), [#allocation2], %s572_s25 }
  0x37   : > { %715 = dma.done.wait (%p818_p6), %s213_s26, 1024  }
  0x38   : > { %717 = vsyncadd (%p818_p6), %s213_s26, 4294966272  ;;  %v889_v0 = vld [vmem:[%s216_s28 + $0x20] sm:$0xff]  ;;  %v891_v1 = vld [vmem:[%s216_s28 + $0x28] sm:$0xff]  ;;  %v270_v12 = vlaneseq  ;;  %v741_v19 = vmov 0   ;;  %vm367_vm0 = vcmask 130112   ;;  %vm374_vm1 = vcmask 195712  }
  0x39   : > { %v893_v2 = vld [vmem:[%s216_s28] sm:$0xff]  ;;  %v257_v3 = vadd.f32 %v891_v1, %v889_v0  ;;  %v897_v4 = vld [vmem:[%s216_s28 + $0x8] sm:$0xff]  ;;  %v899_v5 = vld [vmem:[%s216_s28 + $0x30] sm:$0xff]  ;;  %635 = vset.pattern.permute.xlu1 %v741_v19  ;;  %634 = vset.pattern.permute.xlu0 %v741_v19  ;;  %vm381_vm2 = vcmask 261312   ;;  %vm402_vm3 = vcmask 1041409   ;;  %vm405_vm4 = vcmask 254976  }
  0x3a   : > { %v901_v6 = vld [vmem:[%s216_s28 + $0x38] sm:$0xff]  ;;  %v251_v7 = vadd.f32 %v897_v4, %v893_v2  ;;  %v905_v8 = vld [vmem:[%s216_s28 + $0x10] sm:$0xff]  ;;  %v913_v13 = vshrl.u32 %v270_v12, 7  ;;  %v268_v15 = vld [vmem:[%s998_s1] sm:$0x3]  ;;  %v357_v46 = vand.u32 127, %v270_v12 }
  0x3b   : > { %v907_v9 = vld [vmem:[%s216_s28 + $0x18] sm:$0xff]  ;;  %258 = vadd.xlane.f32.xlu1 %v257_v3  ;;  %v260_v10 = vadd.f32 %v901_v6, %v899_v5  ;;  %v574_v44 = vld [vmem:[%s999_s2] ss:$0 sm:$0xff]  ;;  %s242_s10 = scalar_lea.vmem [#allocation5], %s572_s25  ;;  %s582_s13 = sshll.u32 %s796_s22, 10 }
  0x3c   : > { %252 = vadd.xlane.f32.xlu0 %v251_v7  ;;  %v254_v11 = vadd.f32 %v907_v9, %v905_v8  ;;  %v272_v14 = vsub.s32 0, %v913_v13  ;;  %v291_v17 = vsub.s32 1, %v913_v13  ;;  %v362_v49 = vadd.s32 4294967288, %v357_v46  ;;  %s492_s11 = sshll.u32 %s242_s10, 4  ;;  %s951_s26 = scalar_lea.hbm %s1002_s5, %s582_s13  ;;  %s946_s11 = int_to_ptr.vmem [resolvable:$true] %s492_s11 }
  0x3d   : > { %v369_v50 = vadd.s32 4294967280, %v357_v46  ;;  %v376_v51 = vadd.s32 4294967272, %v357_v46  ;;  %v360_v55 = vsub.s32 %v357_v46, %v913_v13  ;;  %s479_s22 = scalar_lea.sflag [#allocation4], %s879_s23  ;;  %s670_s28 = scalar_lea.vmem %s946_s11, 1024 }
  0x3e   : > { %v273_v16 = vrot.slane %v268_v15, %v272_v14  ;;  %v292_v18 = vrot.slane %v268_v15, %v291_v17  ;;  %v365_v54 = vsub.s32 %v362_v49, %v913_v13  ;;  %p671_p6 = scmp.ne.s32.totalorder %s946_s11, %s670_s28  ;;  %p1009_p11 = scmp.ne.s32.totalorder %s1006_s30, 0 }
  0x3f   : > { %261 = vadd.xlane.f32.xlu1 %v260_v10  ;;  %v372_v56 = vsub.s32 %v369_v50, %v913_v13  ;;  %v379_v57 = vsub.s32 %v376_v51, %v913_v13  ;;  %s742_s29 = smov [#allocation5]  }
  0x40   : > { %255 = vadd.xlane.f32.xlu0 %v254_v11  ;;  %p672_p12 = pnand %p671_p6, %p1009_p11  ;;  %s674_s12 = sshll.u32 %s742_s29, 4  ;;  %s675_s12 = int_to_ptr.vmem [resolvable:$false] %s674_s12 }
  0x41   : > { %s676_s14 = scalar_lea.vmem %s675_s12, 2048  ;;  %p677_p8 = scmp.lt.s32.totalorder %s946_s11, %s675_s12 }
  0x42   : > { %p673_p13 = pneg %p672_p12  ;;  %p678_p10 = scmp.lt.s32.totalorder %s676_s14, %s670_s28 }
  0x44   : > { %p679_p0 = por %p678_p10, %p677_p8 }
  0x46   : > { %p680_p2 = pnand %p679_p0, %p673_p13 }
  0x50   : > { %279 = vbcast.lane.b32.xlu1 %v273_v16, 264 }
  0x54   : > { %294 = vbcast.lane.b32.xlu1 %v292_v18, 256 }
  0x56   : > { %275 = vbcast.lane.b32.xlu0 %v273_v16, 256 }
  0x58   : > { %298 = vbcast.lane.b32.xlu1 %v292_v18, 264 }
  0x5a   : > { %283 = vbcast.lane.b32.xlu0 %v273_v16, 272 }
  0x5c   : > { %302 = vbcast.lane.b32.xlu1 %v292_v18, 272 }
  0x5e   : > { %287 = vbcast.lane.b32.xlu0 %v273_v16, 280 }
  0x60   : > { %306 = vbcast.lane.b32.xlu1 %v292_v18, 280 }
  0xc8   : > { %v259_v20 = vpop.xlane.xlu1 %258 }
  0xc9   : > { %v253_v21 = vpop.xlane.xlu0 %252  ;;  %v266_v33 = vmul.f32 0.00390625, %v259_v20 }
  0xca   : > { %v264_v25 = vmul.f32 0.00390625, %v253_v21 }
  0xcc   : > { %v262_v22 = vpop.xlane.xlu1 %261 }
  0xcd   : > { %v256_v23 = vpop.xlane.xlu0 %255  ;;  %v267_v38 = vmul.f32 0.00390625, %v262_v22 }
  0xce   : > { %v265_v24 = vmul.f32 0.00390625, %v256_v23 }
  0xd0   : > { %v280_v26 = vpop.permute.xlu1 %279 }
  0xd1   : > { %v317_v27 = vmul.f32 %v280_v26, %v265_v24  ;;  %v276_v28 = vpop.permute.xlu0 %275 }
  0xd2   : > { %v316_v29 = vmul.f32 %v276_v28, %v264_v25 }
  0xd3   : > { %336 = vperm.xlu1 %635, %v317_v27   ;;  %v421_v27 = vld [vmem:[%s1000_s3] sm:$0x3] }
  0xd4   : > { %333 = vperm.xlu0 %634, %v316_v29   ;;  %v295_v30 = vpop.permute.xlu1 %294 }
  0xd5   : > { %v320_v31 = vmul.f32 %v295_v30, %v264_v25  ;;  %v284_v32 = vpop.permute.xlu0 %283 }
  0xd6   : > { %v318_v35 = vmul.f32 %v284_v32, %v266_v33 }
  0xd7   : > { %345 = vperm.xlu1 %635, %v320_v31  }
  0xd8   : > { %v299_v34 = vpop.permute.xlu1 %298 }
  0xd9   : > { %v321_v36 = vmul.f32 %v299_v34, %v265_v24  ;;  %v288_v37 = vpop.permute.xlu0 %287 }
  0xda   : > { %v319_v40 = vmul.f32 %v288_v37, %v267_v38 }
  0xdb   : > { %348 = vperm.xlu0 %634, %v321_v36   ;;  %339 = vperm.xlu1 %635, %v318_v35   ;;  %v435_v36 = vld [vmem:[%s1001_s4] sm:$0x1] }
  0xdc   : > { %v303_v39 = vpop.permute.xlu1 %302 }
  0xdd   : > { %v322_v41 = vmul.f32 %v303_v39, %v266_v33 }
  0xdf   : > { %351 = vperm.xlu0 %634, %v322_v41   ;;  %342 = vperm.xlu1 %635, %v319_v40  }
  0xe0   : > { %v307_v42 = vpop.permute.xlu1 %306 }
  0xe1   : > { %v323_v43 = vmul.f32 %v307_v42, %v267_v38 }
  0xe3   : > { %354 = vperm.xlu0 %634, %v323_v43  }
  0xe7   : > { %416 = vbcast.lane.b32.xlu0 %v574_v44, 256 }
 0x152   : > { %v337_v45 = vpop.permute.xlu1 %336 }
 0x153   : > { %v334_v47 = vpop.permute.xlu0 %333  ;;  %v366_v60 = vrot.slane %v337_v45, %v365_v54 }
 0x154   : > { %v361_v61 = vrot.slane %v334_v47, %v360_v55 }
 0x156   : > { %v346_v48 = vpop.permute.xlu1 %345  ;;  %v368_v12 = vsel %vm367_vm0, %v366_v60, %v361_v61 }
 0x157   : > { %v386_v7 = vrot.slane %v346_v48, %v360_v55 }
 0x15a   : > { %v340_v52 = vpop.permute.xlu1 %339  ;;  %v349_v53 = vpop.permute.xlu0 %348 }
 0x15b   : > { %v390_v62 = vrot.slane %v349_v53, %v365_v54  ;;  %v373_v63 = vrot.slane %v340_v52, %v372_v56 }
 0x15d   : > { %v391_v15 = vsel %vm367_vm0, %v390_v62, %v386_v7  ;;  %v375_v17 = vsel %vm374_vm1, %v373_v63, %v368_v12 }
 0x15e   : > { %v343_v58 = vpop.permute.xlu1 %342  ;;  %v352_v59 = vpop.permute.xlu0 %351 }
 0x15f   : > { %v395_v3 = vrot.slane %v352_v59, %v372_v56  ;;  %v380_v10 = vrot.slane %v343_v58, %v379_v57 }
 0x161   : > { %v396_v18 = vsel %vm374_vm1, %v395_v3, %v391_v15  ;;  %v382_v19 = vsel %vm381_vm2, %v380_v10, %v375_v17 }
 0x162   : > { %v355_v11 = vpop.permute.xlu0 %354 }
 0x163   : > { %v400_v16 = vrot.slane %v355_v11, %v379_v57 }
 0x165   : > { %v401_v20 = vsel %vm381_vm2, %v400_v16, %v396_v18 }
 0x166   : > { %v403_v21 = vsel %vm402_vm3, %v401_v20, %v382_v19  ;;  %v417_v23 = vpop.permute.xlu0 %416 }
 0x167   : > { %v406_v22 = vsel %vm405_vm4, %v403_v21, 0.0 }
 0x168   : > { %407 = vadd.xlane.f32.xlu1 %v406_v22 }
 0x1f5   : > { %v408_v24 = vpop.xlane.xlu1 %407 }
 0x1f6   : > { %v419_v25 = vadd.f32 %v417_v23, %v408_v24 }
 0x1f8   : > { %v420_v26 = vmax.f32 %v419_v25, 0.0 }
 0x1fa   : > { %424 = vperm.xlu0 %634, %v420_v26  }
 0x279   : > { %v425_v28 = vpop.permute.xlu0 %424 }
 0x27a   : > { %v427_v29 = vmul.f32 %v425_v28, %v421_v27 }
 0x27c   : > { %v428_v30 = vsel %vm405_vm4, %v427_v29, 0.0 }
 0x27d   : > { %v429_v31 = vrot.slane %v428_v30, 4 }
 0x27f   : > { %v430_v32 = vadd.f32 %v429_v31, %v428_v30 }
 0x281   : > { %v431_v33 = vrot.slane %v430_v32, 2 }
 0x283   : > { %v432_v34 = vadd.f32 %v431_v33, %v430_v32 }
 0x285   : > { %v433_v35 = vrot.slane %v432_v34, 1 }
 0x287   : > { %v434_v37 = vadd.f32 %v433_v35, %v432_v34 }
 0x289   : > { %v436_v38 = vadd.f32 %v435_v36, %v434_v37 }
 0x28b   : > { %v575_v39 = vmul.f32 -1.442695, %v436_v38 }
 0x28d   : > { %636 = vpow2.f32 %v575_v39 }
 0x297   : > { %v637_v40 = vpop.eup %636 }
 0x298   : > { %v440_v41 = vadd.f32 1.0, %v637_v40 }
 0x29a   : > { %638 = vrcp.f32 %v440_v41 }
 0x2a4   : > { %v639_v42 = vpop.eup %638 }
 0x2a5   : > { %v446_v43 = vrot.slane %v639_v42, %v272_v14 }
 0x2a7   : > { %448 = vbcast.lane.b32.xlu0 %v446_v43, 256 }
 0x2ab   : > { %452 = vbcast.lane.b32.xlu0 %v446_v43, 264 }
 0x2af   : > { %456 = vbcast.lane.b32.xlu0 %v446_v43, 272 }
 0x2b3   : > { %460 = vbcast.lane.b32.xlu0 %v446_v43, 280 }
 0x319   : > { %v449_v44 = vpop.permute.xlu0 %448 }
 0x31a   : > { %v462_v45 = vmul.f32 %v449_v44, %v893_v2  ;;  %v463_v46 = vmul.f32 %v449_v44, %v897_v4 }
 0x31c   : > { %470 = vst [vmem:[%s242_s10] sm:$0xff] %v462_v45  ;;  %471 = vst [vmem:[%s242_s10 + $0x8] sm:$0xff] %v463_v46 }
 0x31d   : > { %v453_v47 = vpop.permute.xlu0 %452 }
 0x31e   : > { %v464_v48 = vmul.f32 %v453_v47, %v905_v8  ;;  %v465_v13 = vmul.f32 %v453_v47, %v907_v9 }
 0x320   : > { %472 = vst [vmem:[%s242_s10 + $0x10] sm:$0xff] %v464_v48  ;;  %473 = vst [vmem:[%s242_s10 + $0x18] sm:$0xff] %v465_v13 }
 0x321   : > { %v457_v14 = vpop.permute.xlu0 %456 }
 0x322   : > { %v466_v49 = vmul.f32 %v457_v14, %v889_v0  ;;  %v467_v2 = vmul.f32 %v457_v14, %v891_v1 }
 0x324   : > { %474 = vst [vmem:[%s242_s10 + $0x20] sm:$0xff] %v466_v49  ;;  %475 = vst [vmem:[%s242_s10 + $0x28] sm:$0xff] %v467_v2 }
 0x325   : > { %v461_v4 = vpop.permute.xlu0 %460 }
 0x326   : > { %v468_v8 = vmul.f32 %v461_v4, %v899_v5  ;;  %v469_v0 = vmul.f32 %v461_v4, %v901_v6 }
 0x328   : > { %476 = vst [vmem:[%s242_s10 + $0x30] sm:$0xff] %v468_v8  ;;  %477 = vst [vmem:[%s242_s10 + $0x38] sm:$0xff] %v469_v0 }
 0x329   : > { %683 = shalt.err (!%p680_p2)
}
 0x32a   : > { %s684_s15 = scalar_lea.hbm %s951_s26, 1024  ;;  %s688_s7 = scalar_lea.hbm %s1002_s5, 2048 }
 0x32b   : > { %p685_p4 = scmp.ne.s32.totalorder %s951_s26, %s684_s15  ;;  %p689_p9 = scmp.lt.u32.totalorder %s951_s26, %s1002_s5 }
 0x32c   : > { %p690_p1 = scmp.lt.u32.totalorder %s688_s7, %s684_s15  ;;  %p692_p6 = scmp.lt.u32.totalorder %s684_s15, %s951_s26 }
 0x32d   : > { %p686_p5 = pnand %p685_p4, %p1009_p11 }
 0x32e   : > { %p691_p3 = por %p690_p1, %p689_p9 }
 0x32f   : > { %p687_p7 = pneg %p686_p5 }
 0x330   : > { %p693_p12 = por %p692_p6, %p691_p3 }
 0x332   : > { %p694_p13 = pnand %p693_p12, %p687_p7 }
 0x334   : > { %697 = shalt.err (!%p694_p13)
}
 0x335   : > { %s743_s13 = smov 256   ;;  %s744_s17 = smov 16  }
 0x336   : > { %585 = dma.vmem_to_hbm [thread:$0]  (%p1009_p11), %s946_s11, 1024, %s951_s26, %s479_s22, %s743_s13, %s743_s13, %s744_s17  }
 0x337 PF: > { %s507_s25 = sand.u32 1, %s724_s18   ;;  %p1010_p8 = scmp.ne.s32.totalorder %s1007_s6, 0 }
 0x338   : > { %p1011_p10 = scmp.ge.s32.totalorder %s736_s21, 2  ;;  %s508_s28 = scalar_lea.sflag [#allocation4], %s507_s25 }
 0x33a   : > { %p592_p0 = pnand %p1011_p10, %p1010_p8 }
 0x33c   : > { %719 = dma.done.wait (!%p592_p0), %s508_s28, 1024  }
 0x33d   : > { %721 = vsyncadd (!%p592_p0), %s508_s28, 4294966272  ;;  %p18_p2 = scmp.ge.s32.totalorder %s800_s24, 4   ;;  %s1012_s18 = smov %s728_s19 }
 0x33e   : > { %s1013_s19 = smov %s732_s20  ;;  %s1014_s20 = smov %s812_s27 }
 0x33f   : > { %s1015_s21 = smov %s800_s24  ;;  %20 = sbr.rel (!%p18_p2) target bundleno = 5 (0x5), region = 85 }
 0x346   :  { %513 = vsyncpa [#allocation3], 1 }
 0x347   :  { %515 = vsyncpa [#allocation3 + $0x1], 1 }
 0x348   :  { %516 = vsyncpa [#allocation4], 1 }
 0x349   :  { %518 = vsyncpa [#allocation4 + $0x1], 1 }

</bundles_post_ra>
